<compile_context>
chip_gen: v6e
topology: v6e:2x2x1
jax: 0.10.0
libtpu: 0.0.40
codegen_flags: <defaults>
</compile_context>

<pallas_src>
import math

import jax
import jax.numpy as jnp
from jax import lax
from jax.experimental import pallas as pl
from jax.experimental.pallas import tpu as pltpu

D_IN, H1, H2, D_OUT = 2, 10, 10, 3

_LANE_CHUNK = 512      # in-kernel sub-tile (multiple of 128 lanes)
_MAX_TB = 8192         # batch-tile cap (multiple of _LANE_CHUNK)


def _round_up(n, m):
    return ((n + m - 1) // m) * m


def spiral_mlp_kernel(x_ref, w1_ref, b1_ref, w2_ref, b2_ref, w3_ref, b3_ref, o_ref):
    # x_ref: (D_IN, tb) -- features on sublanes, batch on lanes (lane-dense).
    w1 = w1_ref[...]            # (H1, D_IN)
    b1 = b1_ref[...]            # (H1, 1)
    w2 = w2_ref[...]            # (H2, H1)
    b2 = b2_ref[...]            # (H2, 1)
    w3 = w3_ref[...]            # (D_OUT, H2)
    b3 = b3_ref[...]            # (D_OUT, 1)

    # Hoist tiny loop-invariant weight-column slices out of the chunk loop
    # (JAX does not CSE broadcasts; only (out,1)-sized values stay live).
    w1c = [w1[:, k:k + 1] for k in range(D_IN)]
    w2c = [w2[:, k:k + 1] for k in range(H1)]
    w3c = [w3[:, k:k + 1] for k in range(H2)]

    tb = x_ref.shape[-1]
    n_chunks = tb // _LANE_CHUNK          # tb is a multiple of _LANE_CHUNK

    def chunk_body(c, carry):
        s = pl.multiple_of(c * _LANE_CHUNK, _LANE_CHUNK)
        x = x_ref[:, pl.ds(s, _LANE_CHUNK)]                # (D_IN, CHUNK)

        # ---- linear1 + ReLU: K=2 broadcast FMAs (exact f32, VPU) -----------
        h = w1c[0] * x[0:1, :] + w1c[1] * x[1:2, :] + b1
        h = jnp.maximum(h, 0.0)                            # (H1, CHUNK)

        # ---- linear2 + ReLU: K=10 unrolled broadcast FMAs ------------------
        a = b2 + w2c[0] * h[0:1, :]
        for k in range(1, H1):
            a = a + w2c[k] * h[k:k + 1, :]
        h2 = jnp.maximum(a, 0.0)                           # (H2, CHUNK)

        # ---- linear3: K=10 unrolled broadcast FMAs --------------------------
        y = b3 + w3c[0] * h2[0:1, :]
        for k in range(1, H2):
            y = y + w3c[k] * h2[k:k + 1, :]                # (D_OUT, CHUNK)

        o_ref[:, pl.ds(s, _LANE_CHUNK)] = y.astype(o_ref.dtype)
        return carry

    lax.fori_loop(0, n_chunks, chunk_body, 0, unroll=True)


def _batch_tile(B):
    # Split the batch in two (grid >= 2 once B > 512 -> both v7x TCs busy),
    # quantize to lane-dense 512-sample chunks, cap for unrolled-code size.
    tb = _round_up(pl.cdiv(B, 2), _LANE_CHUNK)
    return min(tb, _MAX_TB)


def spiral_model_forward_t(xt, params):
    """Features-major fast path: xt (D_IN, B) -> (D_OUT, B) logits.

    No wrapper transposes / padding passes: the ragged batch tail is handled by
    Pallas boundary masking on the last grid step.
    """
    w1, b1, w2, b2, w3, b3 = params
    B = xt.shape[-1]
    tb = _batch_tile(B)
    grid_b = pl.cdiv(B, tb)

    def rep(shape):
        # Tiny resident parameter: same (only) block at every grid step.
        return pl.BlockSpec(shape, lambda i: (0, 0))

    return pl.pallas_call(
        spiral_mlp_kernel,
        out_shape=jax.ShapeDtypeStruct((D_OUT, B), jnp.float32),
        grid_spec=pltpu.PrefetchScalarGridSpec(
            num_scalar_prefetch=0,
            grid=(grid_b,),
            in_specs=[
                pl.BlockSpec((D_IN, tb), lambda i: (0, i)),    # x tile (batch on lanes)
                rep((H1, D_IN)), rep((H1, 1)),                 # linear1
                rep((H2, H1)),   rep((H2, 1)),                 # linear2
                rep((D_OUT, H2)), rep((D_OUT, 1)),             # linear3
            ],
            out_specs=pl.BlockSpec((D_OUT, tb), lambda i: (0, i)),
        ),
        compiler_params=pltpu.CompilerParams(
            dimension_semantics=("parallel",),   # independent batch tiles -> shard across TCs
        ),
    )(xt, w1, b1, w2, b2, w3, b3)


def spiral_model_forward(x, params):
    """PyTorch-layout wrapper: x (B, D_IN) -> (B, D_OUT) logits.

    Costs two small layout passes (x.T in, .T out).  Callers that can hold the
    batch features-major should call spiral_model_forward_t directly (zero
    extra HBM passes).
    """
    return spiral_model_forward_t(x.T, params).T


def init_params(key):
    """Deterministic init mimicking nn.Linear default U(-1/sqrt(fan_in), ...).

    Weights kept in the PyTorch-native (out_features, in_features) layout;
    biases are (out_features, 1) so they broadcast along the batch lanes.
    """
    keys = jax.random.split(key, 6)

    def linear(kw, kb, fan_in, fan_out):
        bound = 1.0 / math.sqrt(fan_in)
        w = jax.random.uniform(kw, (fan_out, fan_in), jnp.float32, -bound, bound)
        b = jax.random.uniform(kb, (fan_out, 1), jnp.float32, -bound, bound)
        return w, b

    w1, b1 = linear(keys[0], keys[1], D_IN, H1)
    w2, b2 = linear(keys[2], keys[3], H1, H2)
    w3, b3 = linear(keys[4], keys[5], H2, D_OUT)
    return (w1, b1, w2, b2, w3, b3)


def reference_forward(x, params):
    w1, b1, w2, b2, w3, b3 = params
    hp = jax.lax.Precision.HIGHEST
    h = jnp.maximum(jnp.dot(x, w1.T, precision=hp) + b1[:, 0], 0.0)
    h = jnp.maximum(jnp.dot(h, w2.T, precision=hp) + b2[:, 0], 0.0)
    return jnp.dot(h, w3.T, precision=hp) + b3[:, 0]


if __name__ == "__main__":
    key = jax.random.PRNGKey(0)
    k_params, k_x = jax.random.split(key)
    params = init_params(k_params)

    # B=300: single tile with a masked ragged tail (grid=1).
    # B=1280: two tiles of 1024 lanes (grid=2, exercises v7x 2-TC sharding).
    for B in (300, 1280):
        x = jax.random.normal(jax.random.fold_in(k_x, B), (B, D_IN), dtype=jnp.float32)
        out = jax.block_until_ready(spiral_model_forward(x, params))
        ref = reference_forward(x, params)
        assert out.shape == (B, D_OUT)
        assert jnp.allclose(out, ref, atol=1e-5, rtol=1e-5), f"mismatch vs reference at B={B}"

    # Features-major entry point (no wrapper transposes at all).
    out_t = jax.block_until_ready(spiral_model_forward_t(jnp.asarray(x.T), params))
    assert out_t.shape == (D_OUT, x.shape[0])
    assert jnp.allclose(out_t.T, ref, atol=1e-5, rtol=1e-5), "mismatch in transposed entry point"

    print("KERNEL_OK")
</pallas_src>

<mosaic_0001>
module attributes {stable_mosaic.version = 11 : i64} {
  func.func @spiral_mlp_kernel(%arg0: i32, %arg1: memref<2x512xf32, #tpu.memory_space<vmem>>, %arg2: memref<10x2xf32, #tpu.memory_space<vmem>>, %arg3: memref<10x1xf32, #tpu.memory_space<vmem>>, %arg4: memref<10x10xf32, #tpu.memory_space<vmem>>, %arg5: memref<10x1xf32, #tpu.memory_space<vmem>>, %arg6: memref<3x10xf32, #tpu.memory_space<vmem>>, %arg7: memref<3x1xf32, #tpu.memory_space<vmem>>, %arg8: memref<3x512xf32, #tpu.memory_space<vmem>>) attributes {dimension_semantics = [#tpu.dimension_semantics<parallel>], iteration_bounds = array<i64: 1>, scalar_prefetch = 0 : i64, scratch_operands = 0 : i64, tpu.core_type = #tpu.core_type<tc>, window_params = [{transform_indices = @transform_0, window_bounds = array<i64: 2, 512>}, {pipeline_mode = #tpu.pipeline_mode<synchronous>, transform_indices = @transform_1, window_bounds = array<i64: 10, 2>}, {pipeline_mode = #tpu.pipeline_mode<synchronous>, transform_indices = @transform_2, window_bounds = array<i64: 10, 1>}, {pipeline_mode = #tpu.pipeline_mode<synchronous>, transform_indices = @transform_3, window_bounds = array<i64: 10, 10>}, {pipeline_mode = #tpu.pipeline_mode<synchronous>, transform_indices = @transform_4, window_bounds = array<i64: 10, 1>}, {pipeline_mode = #tpu.pipeline_mode<synchronous>, transform_indices = @transform_5, window_bounds = array<i64: 3, 10>}, {pipeline_mode = #tpu.pipeline_mode<synchronous>, transform_indices = @transform_6, window_bounds = array<i64: 3, 1>}, {transform_indices = @transform_7, window_bounds = array<i64: 3, 512>}]} {
    %c0 = arith.constant 0 : index
    %c0_0 = arith.constant 0 : index
    %0 = vector.load %arg2[%c0, %c0_0] : memref<10x2xf32, #tpu.memory_space<vmem>>, vector<10x2xf32>
    %c0_1 = arith.constant 0 : index
    %c0_2 = arith.constant 0 : index
    %1 = vector.load %arg3[%c0_1, %c0_2] : memref<10x1xf32, #tpu.memory_space<vmem>>, vector<10x1xf32>
    %c0_3 = arith.constant 0 : index
    %c0_4 = arith.constant 0 : index
    %2 = vector.load %arg4[%c0_3, %c0_4] : memref<10x10xf32, #tpu.memory_space<vmem>>, vector<10x10xf32>
    %c0_5 = arith.constant 0 : index
    %c0_6 = arith.constant 0 : index
    %3 = vector.load %arg5[%c0_5, %c0_6] : memref<10x1xf32, #tpu.memory_space<vmem>>, vector<10x1xf32>
    %c0_7 = arith.constant 0 : index
    %c0_8 = arith.constant 0 : index
    %4 = vector.load %arg6[%c0_7, %c0_8] : memref<3x10xf32, #tpu.memory_space<vmem>>, vector<3x10xf32>
    %c0_9 = arith.constant 0 : index
    %c0_10 = arith.constant 0 : index
    %5 = vector.load %arg7[%c0_9, %c0_10] : memref<3x1xf32, #tpu.memory_space<vmem>>, vector<3x1xf32>
    %6 = vector.extract_strided_slice %0 {offsets = [0, 0], sizes = [10, 1], strides = [1, 1]} : vector<10x2xf32> to vector<10x1xf32>
    %7 = vector.extract_strided_slice %0 {offsets = [0, 1], sizes = [10, 1], strides = [1, 1]} : vector<10x2xf32> to vector<10x1xf32>
    %8 = vector.extract_strided_slice %2 {offsets = [0, 0], sizes = [10, 1], strides = [1, 1]} : vector<10x10xf32> to vector<10x1xf32>
    %9 = vector.extract_strided_slice %2 {offsets = [0, 1], sizes = [10, 1], strides = [1, 1]} : vector<10x10xf32> to vector<10x1xf32>
    %10 = vector.extract_strided_slice %2 {offsets = [0, 2], sizes = [10, 1], strides = [1, 1]} : vector<10x10xf32> to vector<10x1xf32>
    %11 = vector.extract_strided_slice %2 {offsets = [0, 3], sizes = [10, 1], strides = [1, 1]} : vector<10x10xf32> to vector<10x1xf32>
    %12 = vector.extract_strided_slice %2 {offsets = [0, 4], sizes = [10, 1], strides = [1, 1]} : vector<10x10xf32> to vector<10x1xf32>
    %13 = vector.extract_strided_slice %2 {offsets = [0, 5], sizes = [10, 1], strides = [1, 1]} : vector<10x10xf32> to vector<10x1xf32>
    %14 = vector.extract_strided_slice %2 {offsets = [0, 6], sizes = [10, 1], strides = [1, 1]} : vector<10x10xf32> to vector<10x1xf32>
    %15 = vector.extract_strided_slice %2 {offsets = [0, 7], sizes = [10, 1], strides = [1, 1]} : vector<10x10xf32> to vector<10x1xf32>
    %16 = vector.extract_strided_slice %2 {offsets = [0, 8], sizes = [10, 1], strides = [1, 1]} : vector<10x10xf32> to vector<10x1xf32>
    %17 = vector.extract_strided_slice %2 {offsets = [0, 9], sizes = [10, 1], strides = [1, 1]} : vector<10x10xf32> to vector<10x1xf32>
    %18 = vector.extract_strided_slice %4 {offsets = [0, 0], sizes = [3, 1], strides = [1, 1]} : vector<3x10xf32> to vector<3x1xf32>
    %19 = vector.extract_strided_slice %4 {offsets = [0, 1], sizes = [3, 1], strides = [1, 1]} : vector<3x10xf32> to vector<3x1xf32>
    %20 = vector.extract_strided_slice %4 {offsets = [0, 2], sizes = [3, 1], strides = [1, 1]} : vector<3x10xf32> to vector<3x1xf32>
    %21 = vector.extract_strided_slice %4 {offsets = [0, 3], sizes = [3, 1], strides = [1, 1]} : vector<3x10xf32> to vector<3x1xf32>
    %22 = vector.extract_strided_slice %4 {offsets = [0, 4], sizes = [3, 1], strides = [1, 1]} : vector<3x10xf32> to vector<3x1xf32>
    %23 = vector.extract_strided_slice %4 {offsets = [0, 5], sizes = [3, 1], strides = [1, 1]} : vector<3x10xf32> to vector<3x1xf32>
    %24 = vector.extract_strided_slice %4 {offsets = [0, 6], sizes = [3, 1], strides = [1, 1]} : vector<3x10xf32> to vector<3x1xf32>
    %25 = vector.extract_strided_slice %4 {offsets = [0, 7], sizes = [3, 1], strides = [1, 1]} : vector<3x10xf32> to vector<3x1xf32>
    %26 = vector.extract_strided_slice %4 {offsets = [0, 8], sizes = [3, 1], strides = [1, 1]} : vector<3x10xf32> to vector<3x1xf32>
    %27 = vector.extract_strided_slice %4 {offsets = [0, 9], sizes = [3, 1], strides = [1, 1]} : vector<3x10xf32> to vector<3x1xf32>
    %c0_i32 = arith.constant 0 : i32
    %c512_i32 = arith.constant 512 : i32
    %28 = arith.muli %c0_i32, %c512_i32 : i32
    %29 = tpu.assume_multiple %28, 512 : i32
    %c0_11 = arith.constant 0 : index
    %30 = arith.index_cast %29 : i32 to index
    %31 = vector.load %arg1[%c0_11, %30] : memref<2x512xf32, #tpu.memory_space<vmem>>, vector<2x512xf32>
    %32 = vector.extract_strided_slice %31 {offsets = [0, 0], sizes = [1, 512], strides = [1, 1]} : vector<2x512xf32> to vector<1x512xf32>
    %33 = vector.broadcast %6 : vector<10x1xf32> to vector<10x512xf32>
    %34 = vector.broadcast %32 : vector<1x512xf32> to vector<10x512xf32>
    %35 = arith.mulf %33, %34 : vector<10x512xf32>
    %36 = vector.extract_strided_slice %31 {offsets = [1, 0], sizes = [1, 512], strides = [1, 1]} : vector<2x512xf32> to vector<1x512xf32>
    %37 = vector.broadcast %7 : vector<10x1xf32> to vector<10x512xf32>
    %38 = vector.broadcast %36 : vector<1x512xf32> to vector<10x512xf32>
    %39 = arith.mulf %37, %38 : vector<10x512xf32>
    %40 = arith.addf %35, %39 : vector<10x512xf32>
    %41 = vector.broadcast %1 : vector<10x1xf32> to vector<10x512xf32>
    %42 = arith.addf %40, %41 : vector<10x512xf32>
    %cst = arith.constant 0.000000e+00 : f32
    %43 = vector.broadcast %cst : f32 to vector<10x512xf32>
    %44 = arith.maximumf %42, %43 : vector<10x512xf32>
    %45 = vector.extract_strided_slice %44 {offsets = [0, 0], sizes = [1, 512], strides = [1, 1]} : vector<10x512xf32> to vector<1x512xf32>
    %46 = vector.broadcast %8 : vector<10x1xf32> to vector<10x512xf32>
    %47 = vector.broadcast %45 : vector<1x512xf32> to vector<10x512xf32>
    %48 = arith.mulf %46, %47 : vector<10x512xf32>
    %49 = vector.broadcast %3 : vector<10x1xf32> to vector<10x512xf32>
    %50 = arith.addf %49, %48 : vector<10x512xf32>
    %51 = vector.extract_strided_slice %44 {offsets = [1, 0], sizes = [1, 512], strides = [1, 1]} : vector<10x512xf32> to vector<1x512xf32>
    %52 = vector.broadcast %9 : vector<10x1xf32> to vector<10x512xf32>
    %53 = vector.broadcast %51 : vector<1x512xf32> to vector<10x512xf32>
    %54 = arith.mulf %52, %53 : vector<10x512xf32>
    %55 = arith.addf %50, %54 : vector<10x512xf32>
    %56 = vector.extract_strided_slice %44 {offsets = [2, 0], sizes = [1, 512], strides = [1, 1]} : vector<10x512xf32> to vector<1x512xf32>
    %57 = vector.broadcast %10 : vector<10x1xf32> to vector<10x512xf32>
    %58 = vector.broadcast %56 : vector<1x512xf32> to vector<10x512xf32>
    %59 = arith.mulf %57, %58 : vector<10x512xf32>
    %60 = arith.addf %55, %59 : vector<10x512xf32>
    %61 = vector.extract_strided_slice %44 {offsets = [3, 0], sizes = [1, 512], strides = [1, 1]} : vector<10x512xf32> to vector<1x512xf32>
    %62 = vector.broadcast %11 : vector<10x1xf32> to vector<10x512xf32>
    %63 = vector.broadcast %61 : vector<1x512xf32> to vector<10x512xf32>
    %64 = arith.mulf %62, %63 : vector<10x512xf32>
    %65 = arith.addf %60, %64 : vector<10x512xf32>
    %66 = vector.extract_strided_slice %44 {offsets = [4, 0], sizes = [1, 512], strides = [1, 1]} : vector<10x512xf32> to vector<1x512xf32>
    %67 = vector.broadcast %12 : vector<10x1xf32> to vector<10x512xf32>
    %68 = vector.broadcast %66 : vector<1x512xf32> to vector<10x512xf32>
    %69 = arith.mulf %67, %68 : vector<10x512xf32>
    %70 = arith.addf %65, %69 : vector<10x512xf32>
    %71 = vector.extract_strided_slice %44 {offsets = [5, 0], sizes = [1, 512], strides = [1, 1]} : vector<10x512xf32> to vector<1x512xf32>
    %72 = vector.broadcast %13 : vector<10x1xf32> to vector<10x512xf32>
    %73 = vector.broadcast %71 : vector<1x512xf32> to vector<10x512xf32>
    %74 = arith.mulf %72, %73 : vector<10x512xf32>
    %75 = arith.addf %70, %74 : vector<10x512xf32>
    %76 = vector.extract_strided_slice %44 {offsets = [6, 0], sizes = [1, 512], strides = [1, 1]} : vector<10x512xf32> to vector<1x512xf32>
    %77 = vector.broadcast %14 : vector<10x1xf32> to vector<10x512xf32>
    %78 = vector.broadcast %76 : vector<1x512xf32> to vector<10x512xf32>
    %79 = arith.mulf %77, %78 : vector<10x512xf32>
    %80 = arith.addf %75, %79 : vector<10x512xf32>
    %81 = vector.extract_strided_slice %44 {offsets = [7, 0], sizes = [1, 512], strides = [1, 1]} : vector<10x512xf32> to vector<1x512xf32>
    %82 = vector.broadcast %15 : vector<10x1xf32> to vector<10x512xf32>
    %83 = vector.broadcast %81 : vector<1x512xf32> to vector<10x512xf32>
    %84 = arith.mulf %82, %83 : vector<10x512xf32>
    %85 = arith.addf %80, %84 : vector<10x512xf32>
    %86 = vector.extract_strided_slice %44 {offsets = [8, 0], sizes = [1, 512], strides = [1, 1]} : vector<10x512xf32> to vector<1x512xf32>
    %87 = vector.broadcast %16 : vector<10x1xf32> to vector<10x512xf32>
    %88 = vector.broadcast %86 : vector<1x512xf32> to vector<10x512xf32>
    %89 = arith.mulf %87, %88 : vector<10x512xf32>
    %90 = arith.addf %85, %89 : vector<10x512xf32>
    %91 = vector.extract_strided_slice %44 {offsets = [9, 0], sizes = [1, 512], strides = [1, 1]} : vector<10x512xf32> to vector<1x512xf32>
    %92 = vector.broadcast %17 : vector<10x1xf32> to vector<10x512xf32>
    %93 = vector.broadcast %91 : vector<1x512xf32> to vector<10x512xf32>
    %94 = arith.mulf %92, %93 : vector<10x512xf32>
    %95 = arith.addf %90, %94 : vector<10x512xf32>
    %cst_12 = arith.constant 0.000000e+00 : f32
    %96 = vector.broadcast %cst_12 : f32 to vector<10x512xf32>
    %97 = arith.maximumf %95, %96 : vector<10x512xf32>
    %98 = vector.extract_strided_slice %97 {offsets = [0, 0], sizes = [1, 512], strides = [1, 1]} : vector<10x512xf32> to vector<1x512xf32>
    %99 = vector.broadcast %18 : vector<3x1xf32> to vector<3x512xf32>
    %100 = vector.broadcast %98 : vector<1x512xf32> to vector<3x512xf32>
    %101 = arith.mulf %99, %100 : vector<3x512xf32>
    %102 = vector.broadcast %5 : vector<3x1xf32> to vector<3x512xf32>
    %103 = arith.addf %102, %101 : vector<3x512xf32>
    %104 = vector.extract_strided_slice %97 {offsets = [1, 0], sizes = [1, 512], strides = [1, 1]} : vector<10x512xf32> to vector<1x512xf32>
    %105 = vector.broadcast %19 : vector<3x1xf32> to vector<3x512xf32>
    %106 = vector.broadcast %104 : vector<1x512xf32> to vector<3x512xf32>
    %107 = arith.mulf %105, %106 : vector<3x512xf32>
    %108 = arith.addf %103, %107 : vector<3x512xf32>
    %109 = vector.extract_strided_slice %97 {offsets = [2, 0], sizes = [1, 512], strides = [1, 1]} : vector<10x512xf32> to vector<1x512xf32>
    %110 = vector.broadcast %20 : vector<3x1xf32> to vector<3x512xf32>
    %111 = vector.broadcast %109 : vector<1x512xf32> to vector<3x512xf32>
    %112 = arith.mulf %110, %111 : vector<3x512xf32>
    %113 = arith.addf %108, %112 : vector<3x512xf32>
    %114 = vector.extract_strided_slice %97 {offsets = [3, 0], sizes = [1, 512], strides = [1, 1]} : vector<10x512xf32> to vector<1x512xf32>
    %115 = vector.broadcast %21 : vector<3x1xf32> to vector<3x512xf32>
    %116 = vector.broadcast %114 : vector<1x512xf32> to vector<3x512xf32>
    %117 = arith.mulf %115, %116 : vector<3x512xf32>
    %118 = arith.addf %113, %117 : vector<3x512xf32>
    %119 = vector.extract_strided_slice %97 {offsets = [4, 0], sizes = [1, 512], strides = [1, 1]} : vector<10x512xf32> to vector<1x512xf32>
    %120 = vector.broadcast %22 : vector<3x1xf32> to vector<3x512xf32>
    %121 = vector.broadcast %119 : vector<1x512xf32> to vector<3x512xf32>
    %122 = arith.mulf %120, %121 : vector<3x512xf32>
    %123 = arith.addf %118, %122 : vector<3x512xf32>
    %124 = vector.extract_strided_slice %97 {offsets = [5, 0], sizes = [1, 512], strides = [1, 1]} : vector<10x512xf32> to vector<1x512xf32>
    %125 = vector.broadcast %23 : vector<3x1xf32> to vector<3x512xf32>
    %126 = vector.broadcast %124 : vector<1x512xf32> to vector<3x512xf32>
    %127 = arith.mulf %125, %126 : vector<3x512xf32>
    %128 = arith.addf %123, %127 : vector<3x512xf32>
    %129 = vector.extract_strided_slice %97 {offsets = [6, 0], sizes = [1, 512], strides = [1, 1]} : vector<10x512xf32> to vector<1x512xf32>
    %130 = vector.broadcast %24 : vector<3x1xf32> to vector<3x512xf32>
    %131 = vector.broadcast %129 : vector<1x512xf32> to vector<3x512xf32>
    %132 = arith.mulf %130, %131 : vector<3x512xf32>
    %133 = arith.addf %128, %132 : vector<3x512xf32>
    %134 = vector.extract_strided_slice %97 {offsets = [7, 0], sizes = [1, 512], strides = [1, 1]} : vector<10x512xf32> to vector<1x512xf32>
    %135 = vector.broadcast %25 : vector<3x1xf32> to vector<3x512xf32>
    %136 = vector.broadcast %134 : vector<1x512xf32> to vector<3x512xf32>
    %137 = arith.mulf %135, %136 : vector<3x512xf32>
    %138 = arith.addf %133, %137 : vector<3x512xf32>
    %139 = vector.extract_strided_slice %97 {offsets = [8, 0], sizes = [1, 512], strides = [1, 1]} : vector<10x512xf32> to vector<1x512xf32>
    %140 = vector.broadcast %26 : vector<3x1xf32> to vector<3x512xf32>
    %141 = vector.broadcast %139 : vector<1x512xf32> to vector<3x512xf32>
    %142 = arith.mulf %140, %141 : vector<3x512xf32>
    %143 = arith.addf %138, %142 : vector<3x512xf32>
    %144 = vector.extract_strided_slice %97 {offsets = [9, 0], sizes = [1, 512], strides = [1, 1]} : vector<10x512xf32> to vector<1x512xf32>
    %145 = vector.broadcast %27 : vector<3x1xf32> to vector<3x512xf32>
    %146 = vector.broadcast %144 : vector<1x512xf32> to vector<3x512xf32>
    %147 = arith.mulf %145, %146 : vector<3x512xf32>
    %148 = arith.addf %143, %147 : vector<3x512xf32>
    %c0_13 = arith.constant 0 : index
    %149 = arith.index_cast %29 : i32 to index
    %150 = vector.load %arg8[%c0_13, %149] : memref<3x512xf32, #tpu.memory_space<vmem>>, vector<3x512xf32>
    tpu.vector_store %arg8[%c0_13, %149], %148 {strides = array<i32>} : memref<3x512xf32, #tpu.memory_space<vmem>>, vector<3x512xf32>,
    %c1_i32 = arith.constant 1 : i32
    return
  }
  func.func @transform_0(%arg0: i32) -> (i32, i32) {
    %c0_i32 = arith.constant 0 : i32
    %c0_i32_0 = arith.constant 0 : i32
    return %c0_i32, %arg0 : i32, i32
  }
  func.func @transform_1(%arg0: i32) -> (i32, i32) {
    %c0_i32 = arith.constant 0 : i32
    %c0_i32_0 = arith.constant 0 : i32
    %c0_i32_1 = arith.constant 0 : i32
    return %c0_i32, %c0_i32_0 : i32, i32
  }
  func.func @transform_2(%arg0: i32) -> (i32, i32) {
    %c0_i32 = arith.constant 0 : i32
    %c0_i32_0 = arith.constant 0 : i32
    %c0_i32_1 = arith.constant 0 : i32
    return %c0_i32, %c0_i32_0 : i32, i32
  }
  func.func @transform_3(%arg0: i32) -> (i32, i32) {
    %c0_i32 = arith.constant 0 : i32
    %c0_i32_0 = arith.constant 0 : i32
    %c0_i32_1 = arith.constant 0 : i32
    return %c0_i32, %c0_i32_0 : i32, i32
  }
  func.func @transform_4(%arg0: i32) -> (i32, i32) {
    %c0_i32 = arith.constant 0 : i32
    %c0_i32_0 = arith.constant 0 : i32
    %c0_i32_1 = arith.constant 0 : i32
    return %c0_i32, %c0_i32_0 : i32, i32
  }
  func.func @transform_5(%arg0: i32) -> (i32, i32) {
    %c0_i32 = arith.constant 0 : i32
    %c0_i32_0 = arith.constant 0 : i32
    %c0_i32_1 = arith.constant 0 : i32
    return %c0_i32, %c0_i32_0 : i32, i32
  }
  func.func @transform_6(%arg0: i32) -> (i32, i32) {
    %c0_i32 = arith.constant 0 : i32
    %c0_i32_0 = arith.constant 0 : i32
    %c0_i32_1 = arith.constant 0 : i32
    return %c0_i32, %c0_i32_0 : i32, i32
  }
  func.func @transform_7(%arg0: i32) -> (i32, i32) {
    %c0_i32 = arith.constant 0 : i32
    %c0_i32_0 = arith.constant 0 : i32
    return %c0_i32, %arg0 : i32, i32
  }
}

</mosaic_0001>

<bundles_post_ra>
// kernel: tpu_custom_call.1
= control target key start
LH: loop header
LB: loop body
LE: loop exit
PB: predicated region body
PF: predicated region fallthrough
CT: control target
= control target key end

     0   :  { %v973_v1 = vmov 1   ;;  %v974_v2 = vmov 0   ;;  %s1533_s0 = inlined_call_operand.vmem [shape: f32[2,300], index: 0, kind: input, shape index: {}]   ;;  %s1534_s1 = inlined_call_operand.vmem [shape: f32[10,2], index: 1, kind: input, shape index: {}]   ;;  %s1535_s2 = inlined_call_operand.vmem [shape: f32[10,1], index: 2, kind: input, shape index: {}]   ;;  %s1536_s3 = inlined_call_operand.vmem [shape: f32[10,10], index: 3, kind: input, shape index: {}]   ;;  %s1537_s4 = inlined_call_operand.vmem [shape: f32[10,1], index: 4, kind: input, shape index: {}]   ;;  %s1538_s5 = inlined_call_operand.vmem [shape: f32[3,10], index: 5, kind: input, shape index: {}]   ;;  %s1539_s6 = inlined_call_operand.vmem [shape: f32[3,1], index: 6, kind: input, shape index: {}]   ;;  %s1540_s7 = inlined_call_operand.hbm [shape: f32[3,300], index: 7, kind: output, shape index: {}]  }
   0x1   :  { %v27_v0 = vld [vmem:[%s1534_s1] sm:$0xff]  ;;  %921 = vset.pattern.permute.xlu1 %v973_v1  ;;  %920 = vset.pattern.permute.xlu0 %v974_v2  ;;  %v28_v3 = vld [vmem:[%s1534_s1 + $0x8] sm:$0x3] }
   0x2   :  { %94 = vperm.xlu1 %921, %v27_v0   ;;  %40 = vperm.xlu0 %920, %v27_v0  }
   0x3   :  { %12 = vsyncpa [#allocation3], 0  ;;  %v29_v4 = vld [vmem:[%s1535_s2] sm:$0xff]  ;;  %v30_v5 = vld [vmem:[%s1535_s2 + $0x8] sm:$0x3]  ;;  %v975_v10 = vmov 3   ;;  %v49_v20 = vlaneseq }
   0x4   :  { %v31_v6 = vld [vmem:[%s1536_s3] sm:$0xff]  ;;  %v1045_v7 = vld [vmem:[%s1536_s3 + $0x8] sm:$0x3]  ;;  %v976_v11 = vmov 2   ;;  %v977_v12 = vmov 9   ;;  %v978_v13 = vmov 4  }
   0x5   :  { %v33_v8 = vld [vmem:[%s1537_s4] sm:$0xff]  ;;  %v34_v9 = vld [vmem:[%s1537_s4 + $0x8] sm:$0x3]  ;;  %v979_v14 = vmov 5   ;;  %v980_v15 = vmov 6   ;;  %v981_v16 = vmov 7  }
   0x6   :  { %98 = vperm.xlu1 %921, %v28_v3   ;;  %45 = vperm.xlu0 %920, %v28_v3   ;;  %v982_v17 = vmov 8   ;;  %v35_v18 = vld [vmem:[%s1538_s5] sm:$0x7]  ;;  %v50_v21 = vshrl.u32 %v49_v20, 7 }
   0x7   :  { %v36_v19 = vld [vmem:[%s1539_s6] sm:$0x7] }
   0x8   :  { %v1073_v22 = vsub.s32 1, %v50_v21  ;;  %v1075_v23 = vsub.s32 3, %v50_v21  ;;  %v1077_v24 = vsub.s32 5, %v50_v21  ;;  %v1079_v25 = vsub.s32 7, %v50_v21  ;;  %v37_v28 = vld [vmem:[%s1533_s0] sm:$0xff] }
   0x9   :  { %v1084_v29 = vsub.s32 0, %v50_v21  ;;  %v1086_v30 = vsub.s32 2, %v50_v21  ;;  %v1088_v31 = vsub.s32 4, %v50_v21  ;;  %v1090_v32 = vsub.s32 6, %v50_v21 }
   0xa   :  { %922 = vset.pattern.permute.xlu1 %v974_v2  ;;  %155 = vperm.xlu0 %920, %v29_v4   ;;  %1563 = vst [vmem:[#allocation5_spill] sm:$0xff] %v1075_v23  ;;  %1564 = vst [vmem:[#allocation6_spill] sm:$0xff] %v1077_v24  ;;  %v104_v33 = vrot.slane %v37_v28, %v1073_v22  ;;  %v108_v34 = vrot.slane %v37_v28, %v1075_v23 }
   0xb   :  { %160 = vperm.xlu1 %922, %v30_v5   ;;  %1565 = vst [vmem:[#allocation7_spill] sm:$0xff] %v1079_v25  ;;  %1566 = vst [vmem:[#allocation8_spill] sm:$0xff] %v1086_v30  ;;  %v112_v35 = vrot.slane %v37_v28, %v1077_v24  ;;  %v116_v36 = vrot.slane %v37_v28, %v1079_v25  ;;  %v52_v39 = vrot.slane %v37_v28, %v1084_v29 }
   0xc   :  { %1567 = vst [vmem:[#allocation9_spill] sm:$0xff] %v1088_v31  ;;  %1568 = vst [vmem:[#allocation10_spill] sm:$0xff] %v1090_v32  ;;  %v56_v40 = vrot.slane %v37_v28, %v1086_v30  ;;  %v60_v41 = vrot.slane %v37_v28, %v1088_v31  ;;  %v64_v42 = vrot.slane %v37_v28, %v1090_v32 }
   0xd   :  { %v124_v43 = vrot.slane %v104_v33, %v1073_v22  ;;  %v128_v44 = vrot.slane %v108_v34, %v1073_v22  ;;  %v132_v45 = vrot.slane %v112_v35, %v1073_v22  ;;  %v136_v46 = vrot.slane %v116_v36, %v1073_v22 }
   0xe   :  { %181 = vperm.xlu0 %920, %v31_v6   ;;  %v72_v48 = vrot.slane %v52_v39, %v1084_v29  ;;  %v76_v49 = vrot.slane %v56_v40, %v1084_v29  ;;  %v80_v50 = vrot.slane %v60_v41, %v1084_v29  ;;  %v84_v51 = vrot.slane %v64_v42, %v1084_v29 }
   0xf   :  { %186 = vperm.xlu1 %922, %v1045_v7  }
  0x12   :  { %215 = vperm.xlu0 %920, %v33_v8  }
  0x13   :  { %220 = vperm.xlu1 %922, %v34_v9  }
  0x16   :  { %923 = vset.pattern.permute.xlu0 %v973_v1 }
  0x17   :  { %924 = vset.pattern.permute.xlu1 %v973_v1  ;;  %232 = vperm.xlu0 %923, %v31_v6  }
  0x18   :  { %236 = vperm.xlu1 %924, %v1045_v7  }
  0x1b   :  { %926 = vset.pattern.permute.xlu0 %v975_v10 }
  0x1c   :  { %925 = vset.pattern.permute.xlu1 %v976_v11  ;;  %312 = vperm.xlu0 %926, %v31_v6  }
  0x1d   :  { %272 = vperm.xlu1 %925, %v31_v6  }
  0x20   :  { %931 = vset.pattern.permute.xlu0 %v977_v12 }
  0x21   :  { %927 = vset.pattern.permute.xlu1 %v978_v13  ;;  %552 = vperm.xlu0 %931, %v31_v6  }
  0x22   :  { %352 = vperm.xlu1 %927, %v31_v6  }
  0x25   :  { %934 = vset.pattern.permute.xlu0 %v978_v13 }
  0x26   :  { %928 = vset.pattern.permute.xlu1 %v979_v14  ;;  %356 = vperm.xlu0 %934, %v1045_v7  }
  0x27   :  { %392 = vperm.xlu1 %928, %v31_v6  }
  0x2a   :  { %935 = vset.pattern.permute.xlu0 %v980_v15 }
  0x2b   :  { %929 = vset.pattern.permute.xlu1 %v981_v16  ;;  %432 = vperm.xlu0 %935, %v31_v6  }
  0x2c   :  { %472 = vperm.xlu1 %929, %v31_v6  }
  0x2f   :  { %436 = vperm.xlu0 %935, %v1045_v7  }
  0x30   :  { %930 = vset.pattern.permute.xlu1 %v982_v17 }
  0x31   :  { %512 = vperm.xlu1 %930, %v31_v6  }
  0x33   :  { %939 = vset.pattern.permute.xlu0 %v981_v16 }
  0x34   :  { %476 = vperm.xlu0 %939, %v1045_v7  }
  0x35   :  { %932 = vset.pattern.permute.xlu1 %v976_v11 }
  0x36   :  { %276 = vperm.xlu1 %932, %v1045_v7  }
  0x38   :  { %942 = vset.pattern.permute.xlu0 %v975_v10 }
  0x39   :  { %690 = vperm.xlu0 %942, %v35_v18  }
  0x3a   :  { %933 = vset.pattern.permute.xlu1 %v975_v10 }
  0x3b   :  { %316 = vperm.xlu1 %933, %v1045_v7  }
  0x3d   :  { %945 = vset.pattern.permute.xlu0 %v979_v14 }
  0x3e   :  { %746 = vperm.xlu0 %945, %v35_v18  }
  0x3f   :  { %936 = vset.pattern.permute.xlu1 %v979_v14 }
  0x40   :  { %396 = vperm.xlu1 %936, %v1045_v7  }
  0x42   :  { %948 = vset.pattern.permute.xlu0 %v982_v17 }
  0x43   :  { %830 = vperm.xlu0 %948, %v35_v18  }
  0x44   :  { %937 = vset.pattern.permute.xlu1 %v974_v2 }
  0x45   :  { %601 = vperm.xlu1 %937, %v35_v18  }
  0x47   :  { %950 = vset.pattern.permute.xlu0 %v977_v12 }
  0x49   :  { %626 = vperm.xlu1 %937, %v36_v19  }
  0x4d   :  { %938 = vset.pattern.permute.xlu1 %v973_v1 }
  0x4e   :  { %634 = vperm.xlu1 %938, %v35_v18  }
  0x52   :  { %940 = vset.pattern.permute.xlu1 %v976_v11 }
  0x53   :  { %662 = vperm.xlu1 %940, %v35_v18  }
  0x57   :  { %941 = vset.pattern.permute.xlu1 %v982_v17 }
  0x58   :  { %516 = vperm.xlu1 %941, %v1045_v7  }
  0x5c   :  { %943 = vset.pattern.permute.xlu1 %v977_v12 }
  0x5d   :  { %556 = vperm.xlu1 %943, %v1045_v7  }
  0x61   :  { %944 = vset.pattern.permute.xlu1 %v978_v13 }
  0x62   :  { %718 = vperm.xlu1 %944, %v35_v18  }
  0x66   :  { %946 = vset.pattern.permute.xlu1 %v980_v15 }
  0x67   :  { %774 = vperm.xlu1 %946, %v35_v18  }
  0x6b   :  { %947 = vset.pattern.permute.xlu1 %v981_v16 }
  0x6c   :  { %802 = vperm.xlu1 %947, %v35_v18  }
  0x70   :  { %949 = vset.pattern.permute.xlu1 %v977_v12 }
  0x71   :  { %858 = vperm.xlu1 %949, %v35_v18  }
  0x7d   :  { %v95_v26 = vpop.permute.xlu1 %94  ;;  %v41_v27 = vpop.permute.xlu0 %40 }
  0x7e   :  { %v137_v53 = vmul.f32 %v124_v43, %v95_v26  ;;  %v138_v54 = vmul.f32 %v128_v44, %v95_v26  ;;  %v139_v55 = vmul.f32 %v132_v45, %v95_v26  ;;  %v140_v56 = vmul.f32 %v136_v46, %v95_v26 }
  0x7f   :  { %v85_v58 = vmul.f32 %v72_v48, %v41_v27  ;;  %v86_v59 = vmul.f32 %v76_v49, %v41_v27  ;;  %v87_v60 = vmul.f32 %v80_v50, %v41_v27  ;;  %v88_v61 = vmul.f32 %v84_v51, %v41_v27 }
  0x81   :  { %v99_v37 = vpop.permute.xlu1 %98  ;;  %v46_v38 = vpop.permute.xlu0 %45  ;;  %v145_v63 = vadd.f32 %v137_v53, %v85_v58  ;;  %v146_v0 = vadd.f32 %v138_v54, %v86_v59  ;;  %v147_v1 = vadd.f32 %v139_v55, %v87_v60  ;;  %v148_v2 = vadd.f32 %v140_v56, %v88_v61 }
  0x82   :  { %v141_v4 = vmul.f32 %v124_v43, %v99_v37  ;;  %v142_v5 = vmul.f32 %v128_v44, %v99_v37  ;;  %v143_v6 = vmul.f32 %v132_v45, %v99_v37  ;;  %v144_v7 = vmul.f32 %v136_v46, %v99_v37 }
  0x83   :  { %v89_v9 = vmul.f32 %v72_v48, %v46_v38  ;;  %v90_v10 = vmul.f32 %v76_v49, %v46_v38  ;;  %v91_v11 = vmul.f32 %v80_v50, %v46_v38  ;;  %v92_v12 = vmul.f32 %v84_v51, %v46_v38 }
  0x85   :  { %v156_v47 = vpop.permute.xlu0 %155  ;;  %v149_v18 = vadd.f32 %v141_v4, %v89_v9  ;;  %v150_v19 = vadd.f32 %v142_v5, %v90_v10  ;;  %v151_v20 = vadd.f32 %v143_v6, %v91_v11  ;;  %v152_v21 = vadd.f32 %v144_v7, %v92_v12 }
  0x86   :  { %v161_v52 = vpop.permute.xlu1 %160  ;;  %v163_v13 = vadd.f32 %v156_v47, %v145_v63  ;;  %v164_v14 = vadd.f32 %v156_v47, %v146_v0  ;;  %v165_v15 = vadd.f32 %v156_v47, %v147_v1  ;;  %v166_v16 = vadd.f32 %v156_v47, %v148_v2 }
  0x87   :  { %v1122_v35 = vadd.f32 %v161_v52, %v149_v18  ;;  %v1124_v36 = vadd.f32 %v161_v52, %v150_v19  ;;  %v1126_v37 = vadd.f32 %v161_v52, %v151_v20  ;;  %v1128_v38 = vadd.f32 %v161_v52, %v152_v21 }
  0x88   :  { %v1114_v26 = vmax.f32 %v163_v13, 0.0  ;;  %v1116_v27 = vmax.f32 %v164_v14, 0.0  ;;  %v1118_v28 = vmax.f32 %v165_v15, 0.0  ;;  %v1120_v33 = vmax.f32 %v166_v16, 0.0 }
  0x89   :  { %v182_v57 = vpop.permute.xlu0 %181 }
  0x8a   :  { %v1108_v62 = vpop.permute.xlu1 %186  ;;  %v192_v40 = vrot.slane %v1114_v26, %v1084_v29  ;;  %v196_v41 = vrot.slane %v1116_v27, %v1084_v29  ;;  %v200_v42 = vrot.slane %v1118_v28, %v1084_v29  ;;  %v204_v43 = vrot.slane %v1120_v33, %v1084_v29 }
  0x8b   :  { %v1144_v54 = vrot.slane %v1114_v26, %v1073_v22  ;;  %v1148_v55 = vrot.slane %v1116_v27, %v1073_v22  ;;  %v1152_v56 = vrot.slane %v1118_v28, %v1073_v22  ;;  %v1156_v58 = vrot.slane %v1120_v33, %v1073_v22 }
  0x8c   :  { %v205_v49 = vmul.f32 %v192_v40, %v182_v57  ;;  %v206_v50 = vmul.f32 %v196_v41, %v182_v57  ;;  %v207_v51 = vmul.f32 %v200_v42, %v182_v57  ;;  %v208_v52 = vmul.f32 %v204_v43, %v182_v57 }
  0x8d   :  { %v216_v8 = vpop.permute.xlu0 %215  ;;  %v1160_v57 = vrot.slane %v1114_v26, %v1086_v30  ;;  %v1164_v59 = vrot.slane %v1116_v27, %v1086_v30  ;;  %v1168_v60 = vrot.slane %v1118_v28, %v1086_v30  ;;  %v1172_v61 = vrot.slane %v1120_v33, %v1086_v30 }
  0x8e   :  { %v1110_v3 = vpop.permute.xlu1 %220  ;;  %v223_v4 = vadd.f32 %v216_v8, %v205_v49  ;;  %v224_v5 = vadd.f32 %v216_v8, %v206_v50  ;;  %v225_v6 = vadd.f32 %v216_v8, %v207_v51  ;;  %v226_v7 = vadd.f32 %v216_v8, %v208_v52 }
  0x8f   :  { %v1185_v15 = vmul.f32 %v192_v40, %v1108_v62  ;;  %v1188_v16 = vmul.f32 %v196_v41, %v1108_v62  ;;  %v1191_v18 = vmul.f32 %v200_v42, %v1108_v62  ;;  %v1194_v8 = vmul.f32 %v204_v43, %v1108_v62 }
  0x90   :  { %v1202_v40 = vrot.slane %v1116_v27, %v1075_v23  ;;  %v1206_v41 = vrot.slane %v1118_v28, %v1075_v23  ;;  %v1210_v62 = vrot.slane %v1120_v33, %v1075_v23  ;;  %v1214_v51 = vrot.slane %v1114_v26, %v1088_v31 }
  0x91   :  { %v1218_v52 = vrot.slane %v1116_v27, %v1088_v31  ;;  %v1256_v45 = vrot.slane %v1114_v26, %v1090_v32 }
  0x92   :  { %v233_v34 = vpop.permute.xlu0 %232 }
  0x93   :  { %v1112_v17 = vpop.permute.xlu1 %236  ;;  %v255_v63 = vmul.f32 %v1144_v54, %v233_v34  ;;  %v256_v0 = vmul.f32 %v1148_v55, %v233_v34  ;;  %v257_v1 = vmul.f32 %v1152_v56, %v233_v34  ;;  %v258_v2 = vmul.f32 %v1156_v58, %v233_v34  ;;  %1569 = vst [vmem:[#allocation11_spill] sm:$0xff] %v1218_v52 }
  0x95   :  { %v263_v19 = vadd.f32 %v255_v63, %v223_v4  ;;  %v264_v20 = vadd.f32 %v256_v0, %v224_v5  ;;  %v265_v21 = vadd.f32 %v257_v1, %v225_v6  ;;  %v266_v34 = vadd.f32 %v258_v2, %v226_v7 }
  0x96   :  { %v1222_v63 = vrot.slane %v1118_v28, %v1088_v31  ;;  %v1226_v0 = vrot.slane %v1120_v33, %v1088_v31  ;;  %v1260_v31 = vrot.slane %v1116_v27, %v1090_v32 }
  0x97   :  { %v313_v44 = vpop.permute.xlu0 %312 }
  0x98   :  { %v273_v39 = vpop.permute.xlu1 %272  ;;  %1570 = vst [vmem:[#allocation12_spill] sm:$0xff] %v1222_v63  ;;  %1571 = vst [vmem:[#allocation13_spill] sm:$0xff] %v1226_v0  ;;  %v336_v5 = vmul.f32 %v1202_v40, %v313_v44  ;;  %v337_v6 = vmul.f32 %v1206_v41, %v313_v44  ;;  %v338_v7 = vmul.f32 %v1210_v62, %v313_v44 }
  0x99   :  { %v295_v10 = vmul.f32 %v1160_v57, %v273_v39  ;;  %v296_v11 = vmul.f32 %v1164_v59, %v273_v39  ;;  %v297_v12 = vmul.f32 %v1168_v60, %v273_v39  ;;  %v298_v13 = vmul.f32 %v1172_v61, %v273_v39  ;;  %1576 = vst [vmem:[#allocation18_spill] sm:$0xff] %v1260_v31 }
  0x9a   :  { %v1198_v39 = vrot.slane %v1114_v26, %v1075_v23 }
  0x9b   :  { %v303_v42 = vadd.f32 %v295_v10, %v263_v19  ;;  %v304_v43 = vadd.f32 %v296_v11, %v264_v20  ;;  %v305_v49 = vadd.f32 %v297_v12, %v265_v21  ;;  %v306_v50 = vadd.f32 %v298_v13, %v266_v34 }
  0x9c   :  { %v1178_v9 = vpop.permute.xlu0 %552  ;;  %v335_v4 = vmul.f32 %v1198_v39, %v313_v44  ;;  %v1236_v10 = vrot.slane %v1114_v26, %v1077_v24  ;;  %v1240_v11 = vrot.slane %v1116_v27, %v1077_v24  ;;  %v1244_v12 = vrot.slane %v1118_v28, %v1077_v24 }
  0x9d   :  { %v353_v53 = vpop.permute.xlu1 %352  ;;  %v1248_v13 = vrot.slane %v1120_v33, %v1077_v24  ;;  %v344_v20 = vadd.f32 %v336_v5, %v304_v43  ;;  %v345_v21 = vadd.f32 %v337_v6, %v305_v49  ;;  %v346_v44 = vadd.f32 %v338_v7, %v306_v50 }
  0x9e   :  { %1572 = vst [vmem:[#allocation14_spill] sm:$0xff] %v1236_v10  ;;  %1573 = vst [vmem:[#allocation15_spill] sm:$0xff] %v1240_v11  ;;  %v343_v19 = vadd.f32 %v335_v4, %v303_v42  ;;  %v375_v34 = vmul.f32 %v1214_v51, %v353_v53  ;;  %v376_v48 = vmul.f32 %v1218_v52, %v353_v53 }
  0x9f   :  { %1574 = vst [vmem:[#allocation16_spill] sm:$0xff] %v1244_v12  ;;  %1575 = vst [vmem:[#allocation17_spill] sm:$0xff] %v1248_v13  ;;  %v377_v47 = vmul.f32 %v1222_v63, %v353_v53  ;;  %v378_v46 = vmul.f32 %v1226_v0, %v353_v53  ;;  %v1264_v42 = vrot.slane %v1118_v28, %v1090_v32 }
  0xa0   :  { %v1268_v43 = vrot.slane %v1120_v33, %v1090_v32  ;;  %v1272_v53 = vrot.slane %v1114_v26, %v1079_v25  ;;  %v1276_v4 = vrot.slane %v1116_v27, %v1079_v25  ;;  %v1280_v5 = vrot.slane %v1118_v28, %v1079_v25 }
  0xa1   :  { %v1228_v1 = vpop.permute.xlu0 %356  ;;  %1577 = vst [vmem:[#allocation19_spill] sm:$0xff] %v1264_v42  ;;  %v1284_v6 = vrot.slane %v1120_v33, %v1079_v25  ;;  %v383_v24 = vadd.f32 %v375_v34, %v343_v19  ;;  %v384_v23 = vadd.f32 %v376_v48, %v344_v20  ;;  %v385_v27 = vadd.f32 %v377_v47, %v345_v21 }
  0xa2   :  { %v393_v14 = vpop.permute.xlu1 %392  ;;  %1578 = vst [vmem:[#allocation20_spill] sm:$0xff] %v1268_v43  ;;  %v386_v0 = vadd.f32 %v378_v46, %v346_v44  ;;  %v1579_v25 = vmax.f32 %v1122_v35, 0.0  ;;  %v1581_v46 = vmax.f32 %v1126_v37, 0.0  ;;  %v1582_v48 = vmax.f32 %v1128_v38, 0.0 }
  0xa3   :  { %v415_v7 = vmul.f32 %v1236_v10, %v393_v14  ;;  %v416_v32 = vmul.f32 %v1240_v11, %v393_v14  ;;  %v417_v30 = vmul.f32 %v1244_v12, %v393_v14  ;;  %v418_v26 = vmul.f32 %v1248_v13, %v393_v14 }
  0xa4   :  { %v1297_v11 = vrot.slane %v1579_v25, %v1084_v29  ;;  %v1580_v14 = vmax.f32 %v1124_v36, 0.0  ;;  %v1307_v47 = vrot.slane %v1581_v46, %v1084_v29  ;;  %v1312_v20 = vrot.slane %v1582_v48, %v1084_v29 }
  0xa5   :  { %v423_v44 = vadd.f32 %v415_v7, %v383_v24  ;;  %v424_v34 = vadd.f32 %v416_v32, %v384_v23  ;;  %v425_v25 = vadd.f32 %v417_v30, %v385_v27  ;;  %v227_v48 = vadd.f32 %v1110_v3, %v1185_v15 }
  0xa6   :  { %v433_v50 = vpop.permute.xlu0 %432  ;;  %v1302_v19 = vrot.slane %v1580_v14, %v1084_v29  ;;  %v228_v23 = vadd.f32 %v1110_v3, %v1188_v16  ;;  %v229_v24 = vadd.f32 %v1110_v3, %v1191_v18  ;;  %v230_v30 = vadd.f32 %v1110_v3, %v1194_v8 }
  0xa7   :  { %v473_v2 = vpop.permute.xlu1 %472  ;;  %v455_v63 = vmul.f32 %v1256_v45, %v433_v50  ;;  %v456_v28 = vmul.f32 %v1260_v31, %v433_v50  ;;  %v457_v52 = vmul.f32 %v1264_v42, %v433_v50  ;;  %v458_v33 = vmul.f32 %v1268_v43, %v433_v50 }
  0xa8   :  { %v426_v50 = vadd.f32 %v418_v26, %v386_v0  ;;  %v495_v13 = vmul.f32 %v1272_v53, %v473_v2  ;;  %v496_v14 = vmul.f32 %v1276_v4, %v473_v2  ;;  %v497_v12 = vmul.f32 %v1280_v5, %v473_v2 }
  0xa9   :  { %v498_v10 = vmul.f32 %v1284_v6, %v473_v2  ;;  %v463_v46 = vadd.f32 %v455_v63, %v423_v44  ;;  %v464_v43 = vadd.f32 %v456_v28, %v424_v34  ;;  %v465_v42 = vadd.f32 %v457_v52, %v425_v25 }
  0xaa   :  { %v466_v31 = vadd.f32 %v458_v33, %v426_v50  ;;  %v259_v15 = vmul.f32 %v1144_v54, %v1112_v17  ;;  %v260_v16 = vmul.f32 %v1148_v55, %v1112_v17  ;;  %v261_v18 = vmul.f32 %v1152_v56, %v1112_v17 }
  0xab   :  { %v262_v3 = vmul.f32 %v1156_v58, %v1112_v17  ;;  %v503_v8 = vadd.f32 %v495_v13, %v463_v46  ;;  %v504_v7 = vadd.f32 %v496_v14, %v464_v43  ;;  %v505_v26 = vadd.f32 %v497_v12, %v465_v42 }
  0xac   :  { %v513_v49 = vpop.permute.xlu1 %512  ;;  %v506_v27 = vadd.f32 %v498_v10, %v466_v31  ;;  %v1584_v54 = vmax.f32 %v1124_v36, 0.0  ;;  %v1585_v55 = vmax.f32 %v1126_v37, 0.0  ;;  %v1586_v17 = vmax.f32 %v1128_v38, 0.0  ;;  %v437_v31 = vpop.permute.xlu0 %436 }
  0xad   :  { %v535_v32 = vmul.f32 %v1297_v11, %v513_v49  ;;  %v536_v0 = vmul.f32 %v1302_v19, %v513_v49  ;;  %v537_v63 = vmul.f32 %v1307_v47, %v513_v49  ;;  %v538_v52 = vmul.f32 %v1312_v20, %v513_v49 }
  0xae   :  { %v1583_v49 = vmax.f32 %v1122_v35, 0.0  ;;  %v1346_v33 = vrot.slane %v1584_v54, %v1073_v22  ;;  %v1351_v56 = vrot.slane %v1585_v55, %v1073_v22  ;;  %v1356_v58 = vrot.slane %v1586_v17, %v1073_v22  ;;  %v1590_v17 = vld [vmem:[#allocation18_spill] sm:$0xff] }
  0xaf   :  { %v543_v10 = vadd.f32 %v535_v32, %v503_v8  ;;  %v544_v35 = vadd.f32 %v536_v0, %v504_v7  ;;  %v545_v12 = vadd.f32 %v537_v63, %v505_v26  ;;  %v546_v13 = vadd.f32 %v538_v52, %v506_v27 }
  0xb0   :  { %v1341_v28 = vrot.slane %v1583_v49, %v1073_v22  ;;  %v267_v42 = vadd.f32 %v259_v15, %v227_v48  ;;  %v268_v43 = vadd.f32 %v260_v16, %v228_v23  ;;  %v269_v36 = vadd.f32 %v261_v18, %v229_v24  ;;  %v1589_v16 = vld [vmem:[#allocation13_spill] sm:$0xff] }
  0xb1   :  { %v277_v21 = vpop.permute.xlu1 %276  ;;  %v270_v44 = vadd.f32 %v262_v3, %v230_v30  ;;  %v576_v25 = vmul.f32 %v1346_v33, %v1178_v9  ;;  %v577_v38 = vmul.f32 %v1351_v56, %v1178_v9  ;;  %v578_v50 = vmul.f32 %v1356_v58, %v1178_v9  ;;  %v477_v3 = vpop.permute.xlu0 %476 }
  0xb2   :  { %v575_v37 = vmul.f32 %v1341_v28, %v1178_v9  ;;  %v299_v14 = vmul.f32 %v1160_v57, %v277_v21  ;;  %v300_v46 = vmul.f32 %v1164_v59, %v277_v21  ;;  %v301_v48 = vmul.f32 %v1168_v60, %v277_v21  ;;  %v1587_v59 = vld [vmem:[#allocation11_spill] sm:$0xff] }
  0xb3   :  { %v302_v23 = vmul.f32 %v1172_v61, %v277_v21  ;;  %v584_v30 = vadd.f32 %v576_v25, %v544_v35  ;;  %v585_v32 = vadd.f32 %v577_v38, %v545_v12  ;;  %v586_v0 = vadd.f32 %v578_v50, %v546_v13  ;;  %v1588_v61 = vld [vmem:[#allocation12_spill] sm:$0xff]  ;;  %v1591_v35 = vld [vmem:[#allocation19_spill] sm:$0xff]  ;;  %v1593_v38 = vld [vmem:[#allocation5_spill] sm:$0xff] }
  0xb4   :  { %v583_v24 = vadd.f32 %v575_v37, %v543_v10  ;;  %v379_v57 = vmul.f32 %v1214_v51, %v1228_v1  ;;  %v380_v60 = vmul.f32 %v1587_v59, %v1228_v1  ;;  %v381_v21 = vmul.f32 %v1588_v61, %v1228_v1  ;;  %v1592_v13 = vld [vmem:[#allocation20_spill] sm:$0xff] }
  0xb5   :  { %v382_v18 = vmul.f32 %v1589_v16, %v1228_v1  ;;  %v308_v8 = vadd.f32 %v300_v46, %v268_v43  ;;  %v310_v7 = vadd.f32 %v302_v23, %v270_v44  ;;  %v1388_v51 = vmax.f32 %v585_v32, 0.0  ;;  %v691_v43 = vpop.permute.xlu0 %690  ;;  %v1594_v23 = vld [vmem:[#allocation14_spill] sm:$0xff]  ;;  %v1596_v32 = vld [vmem:[#allocation16_spill] sm:$0xff] }
  0xb6   :  { %v317_v2 = vpop.permute.xlu1 %316  ;;  %v1390_v26 = vmax.f32 %v586_v0, 0.0  ;;  %v459_v1 = vmul.f32 %v1256_v45, %v437_v31  ;;  %v460_v10 = vmul.f32 %v1590_v17, %v437_v31  ;;  %v461_v12 = vmul.f32 %v1591_v35, %v437_v31 }
  0xb7   :  { %v339_v63 = vmul.f32 %v1198_v39, %v317_v2  ;;  %v340_v52 = vmul.f32 %v1202_v40, %v317_v2  ;;  %v341_v15 = vmul.f32 %v1206_v41, %v317_v2  ;;  %v342_v9 = vmul.f32 %v1210_v62, %v317_v2 }
  0xb8   :  { %v307_v40 = vadd.f32 %v299_v14, %v267_v42  ;;  %v309_v41 = vadd.f32 %v301_v48, %v269_v36  ;;  %v1384_v62 = vmax.f32 %v583_v24, 0.0  ;;  %v1386_v2 = vmax.f32 %v584_v30, 0.0 }
  0xb9   :  { %v348_v49 = vadd.f32 %v340_v52, %v308_v8  ;;  %v350_v55 = vadd.f32 %v342_v9, %v310_v7  ;;  %v462_v42 = vmul.f32 %v1592_v13, %v437_v31  ;;  %v1399_v44 = vmul.f32 %v1272_v53, %v477_v3 }
  0xba   :  { %v347_v27 = vadd.f32 %v339_v63, %v307_v40  ;;  %v349_v54 = vadd.f32 %v341_v15, %v309_v41  ;;  %v1402_v37 = vmul.f32 %v1276_v4, %v477_v3  ;;  %v1405_v25 = vmul.f32 %v1280_v5, %v477_v3  ;;  %v1597_v63 = vld [vmem:[#allocation17_spill] sm:$0xff]  ;;  %v1598_v15 = vld [vmem:[#allocation6_spill] sm:$0xff] }
  0xbb   :  { %v397_v34 = vpop.permute.xlu1 %396  ;;  %v1408_v45 = vmul.f32 %v1284_v6, %v477_v3  ;;  %v696_v50 = vrot.slane %v1384_v62, %v1593_v38  ;;  %v700_v31 = vrot.slane %v1386_v2, %v1593_v38  ;;  %v704_v14 = vrot.slane %v1388_v51, %v1593_v38  ;;  %v1595_v6 = vld [vmem:[#allocation15_spill] sm:$0xff]  ;;  %v747_v3 = vpop.permute.xlu0 %746 }
  0xbc   :  { %v708_v53 = vrot.slane %v1390_v26, %v1593_v38  ;;  %v387_v4 = vadd.f32 %v379_v57, %v347_v27  ;;  %v388_v46 = vadd.f32 %v380_v60, %v348_v49  ;;  %v389_v48 = vadd.f32 %v381_v21, %v349_v54 }
  0xbd   :  { %v390_v5 = vadd.f32 %v382_v18, %v350_v55  ;;  %v419_v24 = vmul.f32 %v1594_v23, %v397_v34  ;;  %v420_v30 = vmul.f32 %v1595_v6, %v397_v34  ;;  %v421_v0 = vmul.f32 %v1596_v32, %v397_v34 }
  0xbe   :  { %v422_v52 = vmul.f32 %v1597_v63, %v397_v34  ;;  %v752_v9 = vrot.slane %v1384_v62, %v1598_v15  ;;  %v756_v59 = vrot.slane %v1386_v2, %v1598_v15  ;;  %v760_v57 = vrot.slane %v1388_v51, %v1598_v15 }
  0xbf   :  { %v764_v60 = vrot.slane %v1390_v26, %v1598_v15  ;;  %v1430_v21 = vmul.f32 %v696_v50, %v691_v43  ;;  %v1432_v16 = vmul.f32 %v700_v31, %v691_v43  ;;  %v1434_v18 = vmul.f32 %v704_v14, %v691_v43 }
  0xc0   :  { %v1382_v39 = vpop.permute.xlu1 %601  ;;  %v1436_v34 = vmul.f32 %v708_v53, %v691_v43  ;;  %v607_v40 = vrot.slane %v1384_v62, %v1084_v29  ;;  %v611_v8 = vrot.slane %v1386_v2, %v1084_v29  ;;  %v615_v41 = vrot.slane %v1388_v51, %v1084_v29 }
  0xc1   :  { %v619_v7 = vrot.slane %v1390_v26, %v1084_v29  ;;  %v427_v27 = vadd.f32 %v419_v24, %v387_v4  ;;  %v428_v49 = vadd.f32 %v420_v30, %v388_v46  ;;  %v429_v54 = vadd.f32 %v421_v0, %v389_v48  ;;  %v1599_v4 = vld [vmem:[#allocation8_spill] sm:$0xff] }
  0xc2   :  { %v430_v55 = vadd.f32 %v422_v52, %v390_v5  ;;  %v1446_v17 = vmul.f32 %v752_v9, %v747_v3  ;;  %v1448_v35 = vmul.f32 %v756_v59, %v747_v3  ;;  %v1450_v13 = vmul.f32 %v760_v57, %v747_v3 }
  0xc3   :  { %v1452_v43 = vmul.f32 %v764_v60, %v747_v3  ;;  %v640_v38 = vrot.slane %v1384_v62, %v1073_v22  ;;  %v644_v50 = vrot.slane %v1386_v2, %v1073_v22  ;;  %v648_v31 = vrot.slane %v1388_v51, %v1073_v22 }
  0xc4   :  { %v1396_v36 = vpop.permute.xlu1 %626  ;;  %v652_v14 = vrot.slane %v1390_v26, %v1073_v22  ;;  %v668_v46 = vrot.slane %v1384_v62, %v1599_v4  ;;  %v672_v48 = vrot.slane %v1386_v2, %v1599_v4  ;;  %v676_v5 = vrot.slane %v1388_v51, %v1599_v4 }
  0xc5   :  { %v680_v23 = vrot.slane %v1390_v26, %v1599_v4  ;;  %v467_v24 = vadd.f32 %v459_v1, %v427_v27  ;;  %v468_v6 = vadd.f32 %v460_v10, %v428_v49  ;;  %v469_v30 = vadd.f32 %v461_v12, %v429_v54 }
  0xc6   :  { %v470_v32 = vadd.f32 %v462_v42, %v430_v55  ;;  %v620_v0 = vmul.f32 %v607_v40, %v1382_v39  ;;  %v621_v63 = vmul.f32 %v611_v8, %v1382_v39  ;;  %v622_v52 = vmul.f32 %v615_v41, %v1382_v39 }
  0xc7   :  { %v623_v15 = vmul.f32 %v619_v7, %v1382_v39  ;;  %v507_v41 = vadd.f32 %v1399_v44, %v467_v24  ;;  %v508_v39 = vadd.f32 %v1402_v37, %v468_v6  ;;  %v509_v7 = vadd.f32 %v1405_v25, %v469_v30 }
  0xc8   :  { %v629_v3 = vadd.f32 %v1396_v36, %v620_v0  ;;  %v630_v4 = vadd.f32 %v1396_v36, %v621_v63  ;;  %v631_v1 = vadd.f32 %v1396_v36, %v622_v52 }
  0xc9   :  { %v635_v61 = vpop.permute.xlu1 %634  ;;  %v632_v10 = vadd.f32 %v1396_v36, %v623_v15 }
  0xca   :  { %v653_v9 = vmul.f32 %v640_v38, %v635_v61  ;;  %v654_v59 = vmul.f32 %v644_v50, %v635_v61  ;;  %v655_v57 = vmul.f32 %v648_v31, %v635_v61  ;;  %v656_v60 = vmul.f32 %v652_v14, %v635_v61 }
  0xcb   :  { %v510_v61 = vadd.f32 %v1408_v45, %v470_v32 }
  0xcc   :  { %v657_v49 = vadd.f32 %v653_v9, %v629_v3  ;;  %v658_v54 = vadd.f32 %v654_v59, %v630_v4  ;;  %v659_v55 = vadd.f32 %v655_v57, %v631_v1  ;;  %v660_v38 = vadd.f32 %v656_v60, %v632_v10  ;;  %v1601_v1 = vld [vmem:[#allocation10_spill] sm:$0xff] }
  0xcd   :  { %v780_v10 = vrot.slane %v1384_v62, %v1601_v1 }
  0xce   :  { %v663_v53 = vpop.permute.xlu1 %662 }
  0xcf   :  { %v681_v42 = vmul.f32 %v668_v46, %v663_v53  ;;  %v682_v40 = vmul.f32 %v672_v48, %v663_v53  ;;  %v683_v8 = vmul.f32 %v676_v5, %v663_v53  ;;  %v684_v27 = vmul.f32 %v680_v23, %v663_v53 }
  0xd1   :  { %v685_v53 = vadd.f32 %v681_v42, %v657_v49  ;;  %v686_v44 = vadd.f32 %v682_v40, %v658_v54  ;;  %v687_v46 = vadd.f32 %v683_v8, %v659_v55  ;;  %v688_v37 = vadd.f32 %v684_v27, %v660_v38 }
  0xd3   :  { %v517_v12 = vpop.permute.xlu1 %516  ;;  %v715_v32 = vadd.f32 %v1434_v18, %v687_v46  ;;  %v716_v0 = vadd.f32 %v1436_v34, %v688_v37  ;;  %v792_v18 = vrot.slane %v1390_v26, %v1601_v1  ;;  %v831_v37 = vpop.permute.xlu0 %830 }
  0xd4   :  { %v539_v50 = vmul.f32 %v1297_v11, %v517_v12  ;;  %v540_v36 = vmul.f32 %v1302_v19, %v517_v12  ;;  %v541_v31 = vmul.f32 %v1307_v47, %v517_v12  ;;  %v542_v14 = vmul.f32 %v1312_v20, %v517_v12  ;;  %v1600_v11 = vld [vmem:[#allocation9_spill] sm:$0xff] }
  0xd5   :  { %v724_v19 = vrot.slane %v1384_v62, %v1600_v11  ;;  %v728_v47 = vrot.slane %v1386_v2, %v1600_v11  ;;  %v732_v20 = vrot.slane %v1388_v51, %v1600_v11  ;;  %v736_v24 = vrot.slane %v1390_v26, %v1600_v11 }
  0xd6   :  { %v547_v6 = vadd.f32 %v539_v50, %v507_v41  ;;  %v549_v30 = vadd.f32 %v541_v31, %v509_v7 }
  0xd8   :  { %v557_v48 = vpop.permute.xlu1 %556 }
  0xd9   :  { %v579_v25 = vmul.f32 %v1341_v28, %v557_v48  ;;  %v580_v45 = vmul.f32 %v1346_v33, %v557_v48  ;;  %v581_v5 = vmul.f32 %v1351_v56, %v557_v48  ;;  %v582_v23 = vmul.f32 %v1356_v58, %v557_v48 }
  0xda   :  { %v548_v28 = vadd.f32 %v540_v36, %v508_v39  ;;  %v550_v33 = vadd.f32 %v542_v14, %v510_v61  ;;  %v713_v56 = vadd.f32 %v1430_v21, %v685_v53  ;;  %v714_v58 = vadd.f32 %v1432_v16, %v686_v44 }
  0xdb   :  { %v587_v63 = vadd.f32 %v579_v25, %v547_v6  ;;  %v589_v15 = vadd.f32 %v581_v5, %v549_v30  ;;  %v784_v21 = vrot.slane %v1386_v2, %v1601_v1  ;;  %v788_v16 = vrot.slane %v1388_v51, %v1601_v1 }
  0xdc   :  { %v588_v52 = vadd.f32 %v580_v45, %v548_v28  ;;  %v590_v9 = vadd.f32 %v582_v23, %v550_v33 }
  0xdd   :  { %v719_v59 = vpop.permute.xlu1 %718  ;;  %v595_v8 = vmax.f32 %v587_v63, 0.0  ;;  %v597_v41 = vmax.f32 %v589_v15, 0.0 }
  0xde   :  { %v737_v57 = vmul.f32 %v724_v19, %v719_v59  ;;  %v738_v60 = vmul.f32 %v728_v47, %v719_v59  ;;  %v739_v3 = vmul.f32 %v732_v20, %v719_v59  ;;  %v740_v4 = vmul.f32 %v736_v24, %v719_v59 }
  0xdf   :  { %v596_v27 = vmax.f32 %v588_v52, 0.0  ;;  %v598_v39 = vmax.f32 %v590_v9, 0.0  ;;  %v836_v14 = vrot.slane %v595_v8, %v1084_v29  ;;  %v844_v44 = vrot.slane %v597_v41, %v1084_v29 }
  0xe0   :  { %v741_v34 = vadd.f32 %v737_v57, %v713_v56  ;;  %v742_v12 = vadd.f32 %v738_v60, %v714_v58  ;;  %v743_v42 = vadd.f32 %v739_v3, %v715_v32  ;;  %v744_v40 = vadd.f32 %v740_v4, %v716_v0 }
  0xe1   :  { %v840_v53 = vrot.slane %v596_v27, %v1084_v29  ;;  %v848_v46 = vrot.slane %v598_v39, %v1084_v29  ;;  %v849_v24 = vmul.f32 %v836_v14, %v831_v37  ;;  %v851_v6 = vmul.f32 %v844_v44, %v831_v37 }
  0xe2   :  { %v775_v7 = vpop.permute.xlu1 %774  ;;  %v769_v61 = vadd.f32 %v1446_v17, %v741_v34  ;;  %v770_v49 = vadd.f32 %v1448_v35, %v742_v12  ;;  %v771_v54 = vadd.f32 %v1450_v13, %v743_v42  ;;  %v772_v55 = vadd.f32 %v1452_v43, %v744_v40  ;;  %v1602_v17 = vld [vmem:[#allocation7_spill] sm:$0xff] }
  0xe3   :  { %v793_v38 = vmul.f32 %v780_v10, %v775_v7  ;;  %v794_v50 = vmul.f32 %v784_v21, %v775_v7  ;;  %v795_v36 = vmul.f32 %v788_v16, %v775_v7  ;;  %v796_v31 = vmul.f32 %v792_v18, %v775_v7 }
  0xe4   :  { %v808_v35 = vrot.slane %v1384_v62, %v1602_v17  ;;  %v812_v13 = vrot.slane %v1386_v2, %v1602_v17  ;;  %v816_v43 = vrot.slane %v1388_v51, %v1602_v17  ;;  %v820_v48 = vrot.slane %v1390_v26, %v1602_v17 }
  0xe5   :  { %v797_v25 = vadd.f32 %v793_v38, %v769_v61  ;;  %v798_v45 = vadd.f32 %v794_v50, %v770_v49  ;;  %v799_v5 = vadd.f32 %v795_v36, %v771_v54  ;;  %v800_v23 = vadd.f32 %v796_v31, %v772_v55 }
  0xe6   :  { %v850_v62 = vmul.f32 %v840_v53, %v831_v37  ;;  %v852_v28 = vmul.f32 %v848_v46, %v831_v37  ;;  %v864_v56 = vrot.slane %v595_v8, %v1073_v22  ;;  %v868_v26 = vrot.slane %v596_v27, %v1073_v22 }
  0xe7   :  { %v803_v11 = vpop.permute.xlu1 %802  ;;  %v872_v58 = vrot.slane %v597_v41, %v1073_v22  ;;  %v876_v32 = vrot.slane %v598_v39, %v1073_v22 }
  0xe8   :  { %v821_v19 = vmul.f32 %v808_v35, %v803_v11  ;;  %v822_v29 = vmul.f32 %v812_v13, %v803_v11  ;;  %v823_v47 = vmul.f32 %v816_v43, %v803_v11  ;;  %v824_v20 = vmul.f32 %v820_v48, %v803_v11 }
  0xea   :  { %v825_v2 = vadd.f32 %v821_v19, %v797_v25  ;;  %v826_v30 = vadd.f32 %v822_v29, %v798_v45  ;;  %v827_v33 = vadd.f32 %v823_v47, %v799_v5  ;;  %v828_v51 = vadd.f32 %v824_v20, %v800_v23 }
  0xec   :  { %v859_v0 = vpop.permute.xlu1 %858  ;;  %v853_v63 = vadd.f32 %v849_v24, %v825_v2  ;;  %v854_v52 = vadd.f32 %v850_v62, %v826_v30  ;;  %v855_v15 = vadd.f32 %v851_v6, %v827_v33  ;;  %v856_v9 = vadd.f32 %v852_v28, %v828_v51 }
  0xed   :  { %v877_v59 = vmul.f32 %v864_v56, %v859_v0  ;;  %v878_v57 = vmul.f32 %v868_v26, %v859_v0  ;;  %v879_v60 = vmul.f32 %v872_v58, %v859_v0  ;;  %v880_v3 = vmul.f32 %v876_v32, %v859_v0 }
  0xef   :  { %v881_v4 = vadd.f32 %v877_v59, %v853_v63  ;;  %v882_v1 = vadd.f32 %v878_v57, %v854_v52  ;;  %v883_v10 = vadd.f32 %v879_v60, %v855_v15  ;;  %v884_v21 = vadd.f32 %v880_v3, %v856_v9 }
  0xf1   :  { %v889_v16 = vcombine.low %v881_v4, %v882_v1  ;;  %v890_v18 = vcombine.low %v883_v10, %v884_v21 }
  0xf3   :  { %893 = vst [vmem:[#allocation2] sm:$0x77] %v889_v16  ;;  %894 = vst [vmem:[#allocation2 + $0x8] sm:$0x77] %v890_v18 }
  0xf4   :  { %899 = vsyncadd [#allocation3], 64  ;;  %s983_s0 = smov [#allocation2]  }
  0xf5   :  { %s901_s17 = sshll.u32 %s983_s0, 4  ;;  %s902_s17 = int_to_ptr.vmem [resolvable:$true] %s901_s17 }
  0xf6   :  { %s951_s18 = scalar_lea.vmem %s902_s17, 192  ;;  %s955_s19 = scalar_lea.vmem %s902_s17, 256 }
  0xf7   :  { %p952_p0 = scmp.ne.s32.totalorder %s902_s17, %s951_s18  ;;  %p956_p1 = scmp.lt.s32.totalorder %s902_s17, %s902_s17 }
  0xf8   :  { %p957_p2 = scmp.lt.s32.totalorder %s955_s19, %s951_s18 }
  0xfa   :  { %p958_p3 = por %p957_p2, %p956_p1 }
  0xfc   :  { %p959_p4 = pnand %p958_p3, %p952_p0 }
  0xfe   :  { %962 = shalt.err (!%p959_p4)
}
  0xff   :  { %904 = dma.vmem_to_hbm [thread:$0]  %s902_s17, 192, %s1540_s7, [#allocation3]  }
 0x100   :  { %971 = dma.done.wait [#allocation3], 256  }
 0x101   :  { %972 = vsyncadd [#allocation3], 4294967040 }
 0x102   :  { %908 = vsyncpa [#allocation3], 1 }

</bundles_post_ra>
